<compile_context>
chip_gen: v7x
topology: tpu7x:2x2x1
jax: 0.10.0
libtpu: 0.0.40
codegen_flags: <defaults>
</compile_context>

<pallas_src>
import numpy as np
import jax
import jax.numpy as jnp
from jax.experimental import pallas as pl
from jax.experimental.pallas import tpu as pltpu


# -----------------------------------------------------------------------------
# Pallas kernel: one batch element per grid step, channels-first.
# -----------------------------------------------------------------------------
def attention_oct_kernel(l_ref, g_ref, wl_ref, wg_ref, kT_ref, wphi_ref,
                         bphi_ref, a_ref, out_ref):
    l = l_ref[0]                                                     # (C_l, HW)

    # 1x1 convs as channel-contraction matmuls (lane axis = spatial, dense).
    l_att = jnp.dot(wl_ref[...], l,
                    preferred_element_type=jnp.float32)              # (A, HW)
    g_att = jnp.dot(wg_ref[...], g_ref[0],
                    preferred_element_type=jnp.float32)              # (A, HgWg)

    # Bilinear 2x upsample (align_corners=False) as an interpolation matmul.
    g_up = jnp.dot(g_att, kT_ref[...],
                   preferred_element_type=jnp.float32)               # (A, HW)

    h = jnp.maximum(l_att + g_up, 0.0)                               # (A, HW)

    # phi: 1x1 conv to a single channel == weighted channel reduction + bias.
    c = jnp.sum(h * wphi_ref[...], axis=0, keepdims=True) + bphi_ref[0, 0]

    # Softmax over the spatial (lane) axis.
    m = jnp.max(c, axis=-1, keepdims=True)
    e = jnp.exp(c - m)
    a = e / jnp.sum(e, axis=-1, keepdims=True)                       # (1, HW)

    a_ref[0] = a
    # output[c] = sum_hw a[hw] * l[c, hw]
    out_ref[0] = jnp.sum(l * a, axis=-1, keepdims=True)              # (C_l, 1)


def attention_oct_pallas(l_flat, g_flat, w_l, w_g, k_T, w_phi, b_phi):
    """l_flat: (N, C_l, H*W), g_flat: (N, C_g, Hg*Wg), all float32.
    Returns (attention (N, 1, H*W), output (N, C_l, 1))."""
    N, C_l, HW = l_flat.shape
    _, C_g, HgWg = g_flat.shape
    A = w_l.shape[0]

    return pl.pallas_call(
        attention_oct_kernel,
        out_shape=(jax.ShapeDtypeStruct((N, 1, HW), jnp.float32),
                   jax.ShapeDtypeStruct((N, C_l, 1), jnp.float32)),
        grid=(N,),
        in_specs=[
            pl.BlockSpec((1, C_l, HW), lambda n: (n, 0, 0)),
            pl.BlockSpec((1, C_g, HgWg), lambda n: (n, 0, 0)),
            pl.BlockSpec((A, C_l), lambda n: (0, 0)),
            pl.BlockSpec((A, C_g), lambda n: (0, 0)),
            pl.BlockSpec((HgWg, HW), lambda n: (0, 0)),
            pl.BlockSpec((A, 1), lambda n: (0, 0)),
            pl.BlockSpec((1, 1), lambda n: (0, 0)),
        ],
        out_specs=(pl.BlockSpec((1, 1, HW), lambda n: (n, 0, 0)),
                   pl.BlockSpec((1, C_l, 1), lambda n: (n, 0, 0))),
        compiler_params=pltpu.CompilerParams(
            dimension_semantics=("parallel",)),
    )(l_flat, g_flat, w_l, w_g, k_T, w_phi, b_phi)


# -----------------------------------------------------------------------------
# Host-side helpers (interpolation matrix construction, plain-JAX reference)
# -----------------------------------------------------------------------------
def bilinear_matrix_half_pixel(n_in, n_out):
    """(n_out, n_in) 1-D linear interpolation matrix matching
    F.interpolate(mode='bilinear', align_corners=False) along one axis."""
    M = np.zeros((n_out, n_in), dtype=np.float32)
    if n_in == 1:
        M[:, 0] = 1.0
        return M
    scale = n_in / n_out
    dst = np.arange(n_out, dtype=np.float64)
    src = np.clip((dst + 0.5) * scale - 0.5, 0.0, n_in - 1)
    i0 = np.minimum(np.floor(src).astype(np.int64), n_in - 1)
    i1 = np.minimum(i0 + 1, n_in - 1)
    frac = (src - i0).astype(np.float32)
    np.add.at(M, (np.arange(n_out), i0), 1.0 - frac)
    np.add.at(M, (np.arange(n_out), i1), frac)
    return M


def reference_forward(l_flat, g_flat, w_l, w_g, Uh, Uw, w_phi, b_phi,
                      Hg, Wgs, H, W):
    """Plain-JAX reference of the same forward pass (spatial upsample form)."""
    N, C_l, HW = l_flat.shape
    A = w_l.shape[0]
    l_att = jnp.einsum('ac,nch->nah', w_l, l_flat)                   # (N, A, HW)
    g_att = jnp.einsum('ac,nch->nah', w_g, g_flat)                   # (N, A, HgWg)
    g_sp = g_att.reshape(N, A, Hg, Wgs)
    g_up = jnp.einsum('oh,nahw->naow', Uh, g_sp)
    g_up = jnp.einsum('pw,naow->naop', Uw, g_up).reshape(N, A, H * W)
    h = jnp.maximum(l_att + g_up, 0.0)
    c = jnp.einsum('a,nah->nh', w_phi[:, 0], h) + b_phi              # (N, HW)
    a = jax.nn.softmax(c, axis=-1)                                   # (N, HW)
    out = jnp.sum(l_flat * a[:, None, :], axis=-1)                   # (N, C_l)
    return a, out


# -----------------------------------------------------------------------------
# Main
# -----------------------------------------------------------------------------
if __name__ == "__main__":
    # AttentionOCT(in_features_l=32, in_features_g=64, attn_features=32,
    #              up_factor=2, normalize_attn=True)
    N = 2
    C_l, C_g, A = 32, 64, 32
    H, W = 16, 16                      # local feature spatial
    up = 2
    Hg, Wgs = H // up, W // up         # global feature spatial

    key = jax.random.PRNGKey(0)
    k_l, k_g, k_wl, k_wg, k_wp, k_bp = jax.random.split(key, 6)

    # Inputs in PyTorch NCHW convention.
    l_nchw = jax.random.normal(k_l, (N, C_l, H, W), dtype=jnp.float32)
    g_nchw = jax.random.normal(k_g, (N, C_g, Hg, Wgs), dtype=jnp.float32)

    # W_l: Conv2d(C_l, A, 1, bias=False); W_g: Conv2d(C_g, A, 1, bias=False);
    # phi: Conv2d(A, 1, 1, bias=True).
    w_l = jax.random.normal(k_wl, (A, C_l), dtype=jnp.float32) / np.sqrt(C_l)
    w_g = jax.random.normal(k_wg, (A, C_g), dtype=jnp.float32) / np.sqrt(C_g)
    w_phi = jax.random.normal(k_wp, (A, 1), dtype=jnp.float32) / np.sqrt(A)
    b_phi = jax.random.normal(k_bp, (1, 1), dtype=jnp.float32) * 0.1

    # Channels-first flatten: NCHW is already (N, C, H*W) — no host transposes.
    l_flat = l_nchw.reshape(N, C_l, H * W)
    g_flat = g_nchw.reshape(N, C_g, Hg * Wgs)

    # Bilinear up_factor=2 (align_corners=False) interpolation matrices.
    Uh = bilinear_matrix_half_pixel(Hg, H)       # (H, Hg)
    Uw = bilinear_matrix_half_pixel(Wgs, W)      # (W, Wgs)
    K = np.kron(Uh, Uw)                          # (H*W, Hg*Wgs)
    k_T = jnp.asarray(K.T)                       # (Hg*Wgs, H*W)

    # Run Pallas kernel.
    a_flat, out_vec = attention_oct_pallas(l_flat, g_flat, w_l, w_g, k_T,
                                           w_phi, b_phi)
    a_flat = jax.block_until_ready(a_flat)
    out_vec = jax.block_until_ready(out_vec)

    a_map = a_flat.reshape(N, 1, H, W)           # attention map, PyTorch layout
    out_feat = out_vec[:, :, 0]                  # (N, C_l)

    # Correctness check against plain-JAX reference.
    a_ref, out_ref = reference_forward(l_flat, g_flat, w_l, w_g,
                                       jnp.asarray(Uh), jnp.asarray(Uw),
                                       w_phi, b_phi[0, 0], Hg, Wgs, H, W)

    assert a_map.shape == (N, 1, H, W)
    assert out_feat.shape == (N, C_l)
    np.testing.assert_allclose(np.asarray(a_flat[:, 0, :]), np.asarray(a_ref),
                               rtol=5e-3, atol=1e-5)
    np.testing.assert_allclose(np.asarray(out_feat), np.asarray(out_ref),
                               rtol=5e-3, atol=1e-3)

    print("KERNEL_OK")
</pallas_src>

<mosaic_0001>
module attributes {stable_mosaic.version = 11 : i64} {
  func.func @attention_oct_kernel(%arg0: i32, %arg1: memref<1x32x256xf32, #tpu.memory_space<vmem>>, %arg2: memref<1x64x64xf32, #tpu.memory_space<vmem>>, %arg3: memref<32x32xf32, #tpu.memory_space<vmem>>, %arg4: memref<32x64xf32, #tpu.memory_space<vmem>>, %arg5: memref<64x256xf32, #tpu.memory_space<vmem>>, %arg6: memref<32x1xf32, #tpu.memory_space<vmem>>, %arg7: memref<1x1xf32, #tpu.memory_space<vmem>>, %arg8: memref<1x1x256xf32, #tpu.memory_space<vmem>>, %arg9: memref<1x32x1xf32, #tpu.memory_space<vmem>>) attributes {dimension_semantics = [#tpu.dimension_semantics<parallel>], iteration_bounds = array<i64: 2>, scalar_prefetch = 0 : i64, scratch_operands = 0 : i64, tpu.core_type = #tpu.core_type<tc>, window_params = [{transform_indices = @transform_0, window_bounds = array<i64: 1, 32, 256>}, {transform_indices = @transform_1, window_bounds = array<i64: 1, 64, 64>}, {pipeline_mode = #tpu.pipeline_mode<synchronous>, transform_indices = @transform_2, window_bounds = array<i64: 32, 32>}, {pipeline_mode = #tpu.pipeline_mode<synchronous>, transform_indices = @transform_3, window_bounds = array<i64: 32, 64>}, {pipeline_mode = #tpu.pipeline_mode<synchronous>, transform_indices = @transform_4, window_bounds = array<i64: 64, 256>}, {pipeline_mode = #tpu.pipeline_mode<synchronous>, transform_indices = @transform_5, window_bounds = array<i64: 32, 1>}, {pipeline_mode = #tpu.pipeline_mode<synchronous>, transform_indices = @transform_6, window_bounds = array<i64: 1, 1>}, {transform_indices = @transform_7, window_bounds = array<i64: 1, 1, 256>}, {transform_indices = @transform_8, window_bounds = array<i64: 1, 32, 1>}]} {
    %c0 = arith.constant 0 : index
    %c0_0 = arith.constant 0 : index
    %c0_1 = arith.constant 0 : index
    %0 = vector.load %arg1[%c0, %c0_0, %c0_1] : memref<1x32x256xf32, #tpu.memory_space<vmem>>, vector<1x32x256xf32>
    %1 = vector.shape_cast %0 : vector<1x32x256xf32> to vector<32x256xf32>
    %c0_2 = arith.constant 0 : index
    %c0_3 = arith.constant 0 : index
    %2 = vector.load %arg3[%c0_2, %c0_3] : memref<32x32xf32, #tpu.memory_space<vmem>>, vector<32x32xf32>
    %cst = arith.constant dense<0.000000e+00> : vector<32x256xf32>
    %3 = tpu.matmul %2, %1, %cst {dimension_numbers = #tpu.dot_dimension_numbers<[1], [0], [0], [1], [0, 0, 1, 1], [], []>} : vector<32x32xf32>, vector<32x256xf32>, vector<32x256xf32> -> vector<32x256xf32>
    %c0_4 = arith.constant 0 : index
    %c0_5 = arith.constant 0 : index
    %4 = vector.load %arg4[%c0_4, %c0_5] : memref<32x64xf32, #tpu.memory_space<vmem>>, vector<32x64xf32>
    %c0_6 = arith.constant 0 : index
    %c0_7 = arith.constant 0 : index
    %c0_8 = arith.constant 0 : index
    %5 = vector.load %arg2[%c0_6, %c0_7, %c0_8] : memref<1x64x64xf32, #tpu.memory_space<vmem>>, vector<1x64x64xf32>
    %6 = vector.shape_cast %5 : vector<1x64x64xf32> to vector<64x64xf32>
    %cst_9 = arith.constant dense<0.000000e+00> : vector<32x64xf32>
    %7 = tpu.matmul %4, %6, %cst_9 {dimension_numbers = #tpu.dot_dimension_numbers<[1], [0], [0], [1], [0, 0, 1, 1], [], []>} : vector<32x64xf32>, vector<64x64xf32>, vector<32x64xf32> -> vector<32x64xf32>
    %c0_10 = arith.constant 0 : index
    %c0_11 = arith.constant 0 : index
    %8 = vector.load %arg5[%c0_10, %c0_11] : memref<64x256xf32, #tpu.memory_space<vmem>>, vector<64x256xf32>
    %cst_12 = arith.constant dense<0.000000e+00> : vector<32x256xf32>
    %9 = tpu.matmul %7, %8, %cst_12 {dimension_numbers = #tpu.dot_dimension_numbers<[1], [0], [0], [1], [0, 0, 1, 1], [], []>} : vector<32x64xf32>, vector<64x256xf32>, vector<32x256xf32> -> vector<32x256xf32>
    %10 = arith.addf %3, %9 : vector<32x256xf32>
    %cst_13 = arith.constant 0.000000e+00 : f32
    %11 = vector.broadcast %cst_13 : f32 to vector<32x256xf32>
    %12 = arith.maximumf %10, %11 : vector<32x256xf32>
    %c0_14 = arith.constant 0 : index
    %c0_15 = arith.constant 0 : index
    %13 = vector.load %arg6[%c0_14, %c0_15] : memref<32x1xf32, #tpu.memory_space<vmem>>, vector<32x1xf32>
    %14 = vector.broadcast %13 : vector<32x1xf32> to vector<32x256xf32>
    %15 = arith.mulf %12, %14 : vector<32x256xf32>
    %cst_16 = arith.constant dense<0.000000e+00> : vector<256xf32>
    %16 = vector.multi_reduction <add>, %15, %cst_16 [0] : vector<32x256xf32> to vector<256xf32>
    %17 = vector.shape_cast %16 : vector<256xf32> to vector<1x256xf32>
    %c0_17 = arith.constant 0 : index
    %c0_18 = arith.constant 0 : index
    %18 = vector.load %arg7[%c0_17, %c0_18] : memref<1x1xf32, #tpu.memory_space<vmem>>, vector<1x1xf32>
    %19 = vector.extract %18[0, 0] : f32 from vector<1x1xf32>
    %20 = vector.broadcast %19 : f32 to vector<1x256xf32>
    %21 = arith.addf %17, %20 : vector<1x256xf32>
    %cst_19 = arith.constant dense<0xFF800000> : vector<1xf32>
    %22 = vector.multi_reduction <maximumf>, %21, %cst_19 [1] : vector<1x256xf32> to vector<1xf32>
    %23 = vector.shape_cast %22 : vector<1xf32> to vector<1x1xf32>
    %24 = vector.broadcast %23 : vector<1x1xf32> to vector<1x256xf32>
    %25 = arith.subf %21, %24 : vector<1x256xf32>
    %26 = math.exp %25 : vector<1x256xf32>
    %cst_20 = arith.constant dense<0.000000e+00> : vector<1xf32>
    %27 = vector.multi_reduction <add>, %26, %cst_20 [1] : vector<1x256xf32> to vector<1xf32>
    %28 = vector.shape_cast %27 : vector<1xf32> to vector<1x1xf32>
    %29 = vector.broadcast %28 : vector<1x1xf32> to vector<1x256xf32>
    %30 = arith.divf %26, %29 : vector<1x256xf32>
    %c0_21 = arith.constant 0 : index
    %c0_22 = arith.constant 0 : index
    %c0_23 = arith.constant 0 : index
    %31 = vector.load %arg8[%c0_21, %c0_22, %c0_23] : memref<1x1x256xf32, #tpu.memory_space<vmem>>, vector<1x1x256xf32>
    %32 = vector.shape_cast %31 : vector<1x1x256xf32> to vector<1x256xf32>
    %33 = vector.shape_cast %30 : vector<1x256xf32> to vector<1x1x256xf32>
    tpu.vector_store %arg8[%c0_21, %c0_22, %c0_23], %33 {strides = array<i32>} : memref<1x1x256xf32, #tpu.memory_space<vmem>>, vector<1x1x256xf32>,
    %34 = vector.broadcast %30 : vector<1x256xf32> to vector<32x256xf32>
    %35 = arith.mulf %1, %34 : vector<32x256xf32>
    %cst_24 = arith.constant dense<0.000000e+00> : vector<32xf32>
    %36 = vector.multi_reduction <add>, %35, %cst_24 [1] : vector<32x256xf32> to vector<32xf32>
    %37 = vector.shape_cast %36 : vector<32xf32> to vector<32x1xf32>
    %c0_25 = arith.constant 0 : index
    %c0_26 = arith.constant 0 : index
    %c0_27 = arith.constant 0 : index
    %38 = vector.load %arg9[%c0_25, %c0_26, %c0_27] : memref<1x32x1xf32, #tpu.memory_space<vmem>>, vector<1x32x1xf32>
    %39 = vector.shape_cast %38 : vector<1x32x1xf32> to vector<32x1xf32>
    %40 = vector.shape_cast %37 : vector<32x1xf32> to vector<1x32x1xf32>
    tpu.vector_store %arg9[%c0_25, %c0_26, %c0_27], %40 {strides = array<i32>} : memref<1x32x1xf32, #tpu.memory_space<vmem>>, vector<1x32x1xf32>,
    return
  }
  func.func @transform_0(%arg0: i32) -> (i32, i32, i32) {
    %c0_i32 = arith.constant 0 : i32
    %c0_i32_0 = arith.constant 0 : i32
    %c0_i32_1 = arith.constant 0 : i32
    return %arg0, %c0_i32, %c0_i32_0 : i32, i32, i32
  }
  func.func @transform_1(%arg0: i32) -> (i32, i32, i32) {
    %c0_i32 = arith.constant 0 : i32
    %c0_i32_0 = arith.constant 0 : i32
    %c0_i32_1 = arith.constant 0 : i32
    return %arg0, %c0_i32, %c0_i32_0 : i32, i32, i32
  }
  func.func @transform_2(%arg0: i32) -> (i32, i32) {
    %c0_i32 = arith.constant 0 : i32
    %c0_i32_0 = arith.constant 0 : i32
    %c0_i32_1 = arith.constant 0 : i32
    return %c0_i32, %c0_i32_0 : i32, i32
  }
  func.func @transform_3(%arg0: i32) -> (i32, i32) {
    %c0_i32 = arith.constant 0 : i32
    %c0_i32_0 = arith.constant 0 : i32
    %c0_i32_1 = arith.constant 0 : i32
    return %c0_i32, %c0_i32_0 : i32, i32
  }
  func.func @transform_4(%arg0: i32) -> (i32, i32) {
    %c0_i32 = arith.constant 0 : i32
    %c0_i32_0 = arith.constant 0 : i32
    %c0_i32_1 = arith.constant 0 : i32
    return %c0_i32, %c0_i32_0 : i32, i32
  }
  func.func @transform_5(%arg0: i32) -> (i32, i32) {
    %c0_i32 = arith.constant 0 : i32
    %c0_i32_0 = arith.constant 0 : i32
    %c0_i32_1 = arith.constant 0 : i32
    return %c0_i32, %c0_i32_0 : i32, i32
  }
  func.func @transform_6(%arg0: i32) -> (i32, i32) {
    %c0_i32 = arith.constant 0 : i32
    %c0_i32_0 = arith.constant 0 : i32
    %c0_i32_1 = arith.constant 0 : i32
    return %c0_i32, %c0_i32_0 : i32, i32
  }
  func.func @transform_7(%arg0: i32) -> (i32, i32, i32) {
    %c0_i32 = arith.constant 0 : i32
    %c0_i32_0 = arith.constant 0 : i32
    %c0_i32_1 = arith.constant 0 : i32
    return %arg0, %c0_i32, %c0_i32_0 : i32, i32, i32
  }
  func.func @transform_8(%arg0: i32) -> (i32, i32, i32) {
    %c0_i32 = arith.constant 0 : i32
    %c0_i32_0 = arith.constant 0 : i32
    %c0_i32_1 = arith.constant 0 : i32
    return %arg0, %c0_i32, %c0_i32_0 : i32, i32, i32
  }
}

</mosaic_0001>

<bundles_post_ra>
// kernel: tpu_custom_call.1
= control target key start
LH: loop header
LB: loop body
LE: loop exit
PB: predicated region body
PF: predicated region fallthrough
CT: control target
= control target key end

     0   :  { %s1874_s0 = inlined_call_operand.hbm [shape: f32[2,32,256], index: 0, kind: input, shape index: {}]   ;;  %s1875_s1 = inlined_call_operand.hbm [shape: f32[2,64,64], index: 1, kind: input, shape index: {}]   ;;  %s1876_s2 = inlined_call_operand.vmem [shape: f32[32,32], index: 2, kind: input, shape index: {}]   ;;  %s1877_s3 = inlined_call_operand.hbm [shape: f32[32,64], index: 3, kind: input, shape index: {}]   ;;  %s1878_s4 = inlined_call_operand.hbm [shape: f32[64,256], index: 4, kind: input, shape index: {}]   ;;  %s1879_s5 = inlined_call_operand.vmem [shape: f32[32,1], index: 5, kind: input, shape index: {}]   ;;  %s1880_s6 = inlined_call_operand.<no memory space> [shape: f32[1,1], index: 6, kind: input, shape index: {}]   ;;  %s1881_s7 = inlined_call_operand.hbm [shape: f32[2,1,256], index: 7, kind: output, shape index: {0}]   ;;  %s1882_s8 = inlined_call_operand.vmem [shape: f32[2,32,1], index: 8, kind: output, shape index: {1}]  }
   0x1   :  { %1890 = sst [smem:[#allocation18_spill]] %s1874_s0  ;;  %v14_v0 = vstv %s1880_s6 }
   0x2   :  { %1891 = sst [smem:[#allocation19_spill]] %s1877_s3  ;;  %15 = vst [vmem:[#allocation2] sm:$0x1] %v14_v0 }
   0x3   :  { %1892 = sst [smem:[#allocation20_spill]] %s1878_s4 }
   0x4   :  { %16 = vsyncpa [#allocation4], 0 }
   0x5   :  { %18 = vsyncpa [#allocation4 + $0x1], 0 }
   0x6   :  { %19 = vsyncpa [#allocation7], 0 }
   0x7   :  { %21 = vsyncpa [#allocation7 + $0x1], 0 }
   0x8   :  { %22 = vsyncpa [#allocation10], 0 }
   0x9   :  { %23 = vsyncpa [#allocation5], 0 }
   0xa   :  { %25 = vsyncpa [#allocation5 + $0x1], 0  ;;  %s1506_s29 = smov 0   ;;  %s1508_s30 = smov 0  }
   0xb   :  { %s1510_s9 = smov 0   ;;  %s1512_s10 = smov 0  }
   0xc LB: > { %s1527_s6 = sadd.s32 4294967295, %s1444_s10   ;;  %s1035_s11 = sadd.s32 4294967294, %s1444_s10   ;;  %s1444_s10 = sphi %s1512_s10, %s1920_s10   ;;  %s1440_s9 = sphi %s1510_s9, %s1919_s9   ;;  %s1436_s30 = sphi %s1508_s30, %s1918_s30   ;;  %s1432_s29 = sphi %s1506_s29, %s1917_s29  }
   0xd   : > { %p51_p0 = scmp.ne.s32.totalorder %s1436_s30, %s1432_s29  ;;  %p1883_p1 = scmp.eq.s32.totalorder %s1527_s6, 0 }
   0xe   : > { %p212_p3 = scmp.eq.s32.totalorder %s1035_s11, 1  ;;  %p1036_p5 = scmp.ge.s32.totalorder %s1444_s10, 1 }
   0xf   : > { %p1536_p4 = por %p1883_p1, %p51_p0  ;;  %p245_p7 = scmp.lt.s32.totalorder %s1444_s10, 3 }
  0x10   : > { %p1541_p6 = por %p212_p3, %p51_p0  ;;  %s1446_s15 = smov [#allocation8]  }
  0x11   : > { %s1893_s12 = scalar_select %p1536_p4, 1, 0 }
  0x12   : > { %s1894_s13 = scalar_select %p1541_p6, 1, 0 }
  0x13   : > { %p1546_p8 = pnand %p1036_p5, %p245_p7  ;;  %s260_s16 = sshll.u32 %s1446_s15, 4  ;;  %s1550_s16 = int_to_ptr.vmem [resolvable:$true] %s260_s16 }
  0x14   : > { %s1447_s18 = smov [#allocation9]   ;;  %s1897_s3 = sld [smem:[#allocation19_spill]] }
  0x15   : > { %p1177_p9 = pneg %p1546_p8  ;;  %s273_s19 = sshll.u32 %s1447_s18, 4  ;;  %s1561_s19 = int_to_ptr.vmem [resolvable:$true] %s273_s19 }
  0x17   : > { %p1557_p11 = pnand %p1177_p9, %p1883_p1 }
  0x19   : > { %p1252_p13 = pneg %p1557_p11 }
  0x1a   : > { %s1250_s22 = scalar_lea.hbm %s1897_s3, 512 }
  0x1b   : > { %p1251_p12 = scmp.ne.s32.totalorder %s1897_s3, %s1250_s22  ;;  %p1257_p5 = scmp.lt.u32.totalorder %s1250_s22, %s1897_s3 }
  0x1d   : > { %p1253_p0 = pnand %p1252_p13, %p1251_p12 }
  0x1f   : > { %p1254_p3 = pneg %p1253_p0 }
  0x21   : > { %p1259_p7 = pnand %p1257_p5, %p1254_p3 }
  0x23   : > { %1262 = shalt.err (!%p1259_p7)
}
  0x24   : > { %s1263_s27 = scalar_lea.vmem %s1550_s16, 512  ;;  %p1271_p2 = scmp.lt.s32.totalorder %s1550_s16, %s1550_s16 }
  0x25   : > { %p1264_p9 = scmp.ne.s32.totalorder %s1550_s16, %s1263_s27  ;;  %p1272_p12 = scmp.lt.s32.totalorder %s1263_s27, %s1263_s27 }
  0x27   : > { %p1266_p10 = pnand %p1264_p9, %p1252_p13  ;;  %p1273_p0 = por %p1272_p12, %p1271_p2 }
  0x29   : > { %p1267_p1 = pneg %p1266_p10 }
  0x2b   : > { %p1274_p6 = pnand %p1273_p0, %p1267_p1 }
  0x2d   : > { %1277 = shalt.err (!%p1274_p6)
}
  0x2e   : > { %s1884_s28 = smov 128   ;;  %s1885_s11 = smov 8  }
  0x2f   : > { %1180 = dma.hbm_to_vmem [thread:$0]  (!%p1557_p11), %s1897_s3, 512, %s1550_s16, [#allocation7], %s1884_s28, %s1884_s28, %s1885_s11  }
  0x30   : > { %s1898_s4 = sld [smem:[#allocation20_spill]] }
  0x36   : > { %s1278_s22 = scalar_lea.hbm %s1898_s4, 2048 }
  0x37   : > { %p1279_p1 = scmp.ne.s32.totalorder %s1898_s4, %s1278_s22  ;;  %p1285_p10 = scmp.lt.u32.totalorder %s1278_s22, %s1898_s4 }
  0x39   : > { %p1281_p2 = pnand %p1279_p1, %p1252_p13 }
  0x3b   : > { %p1282_p6 = pneg %p1281_p2 }
  0x3d   : > { %p1287_p3 = pnand %p1285_p10, %p1282_p6 }
  0x3f   : > { %1290 = shalt.err (!%p1287_p3)
}
  0x40   : > { %s1291_s16 = scalar_lea.vmem %s1561_s19, 2048  ;;  %p1299_p12 = scmp.lt.s32.totalorder %s1561_s19, %s1561_s19 }
  0x41   : > { %p1292_p5 = scmp.ne.s32.totalorder %s1561_s19, %s1291_s16  ;;  %p1300_p0 = scmp.lt.s32.totalorder %s1291_s16, %s1291_s16 }
  0x43   : > { %p1294_p7 = pnand %p1292_p5, %p1252_p13  ;;  %p1301_p1 = por %p1300_p0, %p1299_p12 }
  0x45   : > { %p1295_p9 = pneg %p1294_p7 }
  0x47   : > { %p1302_p2 = pnand %p1301_p1, %p1295_p9 }
  0x49   : > { %1305 = shalt.err (!%p1302_p2)
}
  0x4a   : > { %s1886_s27 = smov 256   ;;  %s1887_s15 = smov 16  }
  0x4b   : > { %1183 = dma.hbm_to_vmem [thread:$0]  (!%p1557_p11), %s1898_s4, 2048, %s1561_s19, [#allocation10], %s1886_s27, %s1886_s27, %s1887_s15  }
  0x4c   : > { %s1622_s21 = sadd.s32 1, %s1444_s10   ;;  %s38_s23 = sadd.s32 1, %s1440_s9 }
  0x4d   : > { %s35_s22 = ssub.s32 %s1444_s10, %s1622_s21  ;;  %p45_p6 = scmp.ne.s32.totalorder %s1440_s9, %s1436_s30 }
  0x4e   : > { %p36_p13 = scmp.eq.s32.totalorder %s35_s22, 0  ;;  %p46_p10 = scmp.eq.s32.totalorder %s1444_s10, 0 }
  0x4f   : > { %p1900_p5 = scmp.eq.s32.totalorder %s1527_s6, 1  ;;  %p1197_p9 = scmp.lt.s32.totalorder %s1444_s10, 2 }
  0x50   : > { %s1631_s24 = scalar_select %p36_p13, %s1440_s9, %s38_s23  }
  0x51   : > { %p47_p3 = por %p46_p10, %p45_p6  ;;  %p1635_p7 = por %p1900_p5, %p45_p6 }
  0x52   : > { %1899 = sst [smem:[#allocation17_spill]] %s1631_s24  ;;  %s293_s25 = sand.u32 1, %s1440_s9  }
  0x53   : > { %s1901_s17 = scalar_select %p1635_p7, 1, 0 }
  0x54   : > { %s1040_s26 = sshll.u32 %s293_s25, 6  ;;  %s1071_s19 = sshll.u32 %s1444_s10, 10 }
  0x55   : > { %s1902_s0 = sld [smem:[#allocation18_spill]]  ;;  %s297_s22 = scalar_lea.vmem [#allocation3], %s1040_s26 }
  0x56   : > { %s304_s23 = sshll.u32 %s297_s22, 4  ;;  %p1649_p11 = pnand %p1197_p9, %p47_p3  ;;  %s1647_s23 = int_to_ptr.vmem [resolvable:$true] %s304_s23 }
  0x57   : > { %s1656_s16 = scalar_lea.hbm %s1875_s1, %s1071_s19  ;;  %s318_s18 = scalar_lea.vmem [#allocation6], %s1040_s26 }
  0x58   : > { %s1658_s15 = sshll.u32 %s318_s18, 4  ;;  %s1660_s3 = scalar_lea.sflag [#allocation4], %s293_s25  ;;  %s1692_s15 = int_to_ptr.vmem [resolvable:$true] %s1658_s15 }
  0x59   : > { %p1308_p0 = pneg %p1649_p11 }
  0x5b   : > { %s1645_s20 = scalar_lea.hbm %s1902_s0, %s1071_s19  ;;  %s1311_s11 = scalar_lea.hbm %s1902_s0, 2048 }
  0x5c   : > { %s1306_s22 = scalar_lea.hbm %s1645_s20, 1024  ;;  %p1312_p13 = scmp.lt.u32.totalorder %s1645_s20, %s1902_s0 }
  0x5d   : > { %p1307_p12 = scmp.ne.s32.totalorder %s1645_s20, %s1306_s22  ;;  %p1313_p6 = scmp.lt.u32.totalorder %s1311_s11, %s1306_s22 }
  0x5e   : > { %p1315_p3 = scmp.lt.u32.totalorder %s1306_s22, %s1645_s20 }
  0x5f   : > { %p1309_p1 = pnand %p1308_p0, %p1307_p12  ;;  %p1314_p10 = por %p1313_p6, %p1312_p13 }
  0x61   : > { %p1310_p2 = pneg %p1309_p1  ;;  %p1316_p5 = por %p1315_p3, %p1314_p10 }
  0x63   : > { %p1317_p9 = pnand %p1316_p5, %p1310_p2 }
  0x65   : > { %1320 = shalt.err (!%p1317_p9)
}
  0x66   : > { %s1321_s25 = scalar_lea.vmem %s1647_s23, 1024  ;;  %s1452_s4 = smov [#allocation3]  }
  0x67   : > { %p1322_p12 = scmp.ne.s32.totalorder %s1647_s23, %s1321_s25  ;;  %s1326_s24 = sshll.u32 %s1452_s4, 4  ;;  %s1327_s24 = int_to_ptr.vmem [resolvable:$false] %s1326_s24 }
  0x68   : > { %s1328_s26 = scalar_lea.vmem %s1327_s24, 2048  ;;  %p1329_p4 = scmp.lt.s32.totalorder %s1647_s23, %s1327_s24 }
  0x69   : > { %p1324_p1 = pnand %p1322_p12, %p1308_p0  ;;  %p1330_p13 = scmp.lt.s32.totalorder %s1328_s26, %s1321_s25 }
  0x6b   : > { %p1325_p7 = pneg %p1324_p1  ;;  %p1331_p6 = por %p1330_p13, %p1329_p4 }
  0x6d   : > { %p1332_p10 = pnand %p1331_p6, %p1325_p7 }
  0x6f   : > { %1335 = shalt.err (!%p1332_p10)
}
  0x70   : > { %s1904_s18 = smov 16   ;;  %s1905_s22 = smov 256  }
  0x71   : > { %1187 = dma.hbm_to_vmem [thread:$0]  (!%p1649_p11), %s1645_s20, 1024, %s1647_s23, %s1660_s3, %s1905_s22, %s1905_s22, %s1904_s18  }
  0x72   : > { %s314_s11 = sand.u32 1, %s1444_s10   ;;  %s1336_s19 = scalar_lea.hbm %s1656_s16, 1024 }
  0x73   : > { %s1695_s27 = scalar_lea.sflag [#allocation7], %s314_s11  ;;  %p1337_p4 = scmp.ne.s32.totalorder %s1656_s16, %s1336_s19 }
  0x74   : > { %s1341_s24 = scalar_lea.hbm %s1875_s1, 2048  ;;  %p1342_p3 = scmp.lt.u32.totalorder %s1656_s16, %s1875_s1 }
  0x75   : > { %p1339_p7 = pnand %p1337_p4, %p1308_p0  ;;  %p1343_p5 = scmp.lt.u32.totalorder %s1341_s24, %s1336_s19 }
  0x76   : > { %p1345_p12 = scmp.lt.u32.totalorder %s1336_s19, %s1656_s16 }
  0x77   : > { %p1340_p2 = pneg %p1339_p7  ;;  %p1344_p9 = por %p1343_p5, %p1342_p3 }
  0x79   : > { %p1346_p1 = por %p1345_p12, %p1344_p9 }
  0x7b   : > { %p1347_p13 = pnand %p1346_p1, %p1340_p2 }
  0x7d   : > { %1350 = shalt.err (!%p1347_p13)
}
  0x7e   : > { %s1351_s3 = scalar_lea.vmem %s1692_s15, 1024  ;;  %s1453_s20 = smov [#allocation6]  }
  0x7f   : > { %p1352_p6 = scmp.ne.s32.totalorder %s1692_s15, %s1351_s3  ;;  %s1356_s23 = sshll.u32 %s1453_s20, 4  ;;  %s1357_s23 = int_to_ptr.vmem [resolvable:$false] %s1356_s23 }
  0x80   : > { %s1358_s0 = scalar_lea.vmem %s1357_s23, 2048  ;;  %p1359_p7 = scmp.lt.s32.totalorder %s1692_s15, %s1357_s23 }
  0x81   : > { %p1354_p10 = pnand %p1352_p6, %p1308_p0  ;;  %p1360_p3 = scmp.lt.s32.totalorder %s1358_s0, %s1351_s3 }
  0x83   : > { %p1355_p4 = pneg %p1354_p10  ;;  %p1361_p5 = por %p1360_p3, %p1359_p7 }
  0x85   : > { %p1362_p9 = pnand %p1361_p5, %p1355_p4 }
  0x87   : > { %1365 = shalt.err (!%p1362_p9)
}
  0x88   : > { %s1906_s18 = smov 8   ;;  %s1907_s22 = smov 128  }
  0x89   : > { %1190 = dma.hbm_to_vmem [thread:$0]  (!%p1649_p11), %s1656_s16, 1024, %s1692_s15, %s1695_s27, %s1907_s22, %s1907_s22, %s1906_s18  }
  0x8a   : > { %337 = sbr.rel (%p1546_p8) target bundleno = 1112 (0x458), region = 48  ;;  %s1727_s11 = sand.u32 (!%p1546_p8), 1, %s1436_s30  }
  0x8b   : > { %s1047_s19 = sshll.u32 (!%p1546_p8), %s1727_s11, 6  ;;  %s340_s25 = scalar_lea.sflag (!%p1546_p8), [#allocation4], %s1727_s11 }
  0x8c   : > { %s1731_s4 = scalar_lea.vmem (!%p1546_p8), [#allocation3], %s1047_s19  ;;  %p1908_p0 = scmp.ne.s32.totalorder (!%p1546_p8), %s1893_s12, 0 }
  0x91   : > { %1411 = dma.done.wait (%p1908_p0), %s340_s25, 1024  }
  0x92   : > { %1413 = vsyncadd (%p1908_p0), %s340_s25, 4294966272  ;;  %s348_s28 = sand.u32 1, %s1527_s6   ;;  %s352_s15 = scalar_lea.vmem [#allocation6], %s1047_s19 }
  0x93   : > { %s349_s14 = scalar_lea.sflag [#allocation7], %s348_s28 }
  0x94   : > { %1415 = dma.done.wait (%p1908_p0), %s349_s14, 1024  }
  0x95   : > { %1417 = vsyncadd (%p1908_p0), %s349_s14, 4294966272  ;;  %p1909_p8 = scmp.eq.s32.totalorder %s1527_s6, 0 }
  0x97   : > { %1419 = dma.done.wait (%p1909_p8), [#allocation7], 512   ;;  %p1910_p11 = pmov %p1909_p8 }
  0x98   : > { %p1911_p2 = pmov %p1909_p8 }
  0x99   : > { %1421 = vsyncadd (%p1910_p11), [#allocation7], 4294966784 }
  0x9a   : > { %1423 = dma.done.wait (%p1911_p2), [#allocation10], 2048   ;;  %p1912_p12 = pmov %p1911_p2 }
  0x9b   : > { %v424_v1 = vld [vmem:[%s352_s15] sm:$0xff]  ;;  %v425_v2 = vld [vmem:[%s352_s15 + $0x8] sm:$0xff]  ;;  %v426_v3 = vld [vmem:[%s352_s15 + $0x10] sm:$0xff]  ;;  %vm432_vm0 = vcmask 523264   ;;  %v1454_v53 = vmov 0.0   ;;  %vm647_vm1 = vcmask 261120  }
  0x9c   : > { %1425 = vsyncadd (%p1912_p12), [#allocation10], 4294965248  ;;  %v1109_v4 = vpack.c.bf16 %v425_v2, %v424_v1  ;;  %v427_v5 = vld [vmem:[%s352_s15 + $0x18] sm:$0xff]  ;;  %v428_v7 = vld [vmem:[%s352_s15 + $0x20] sm:$0xff]  ;;  %622 = vmatprep.mubr.f32.mxu1 %v1454_v53  ;;  %v1455_v59 = vmov 0   ;;  %s1051_s12 = sshll.u32 %s1727_s11, 1 }
  0x9d   : > { %v1113_v6 = vpack.c.bf16 %v427_v5, %v426_v3  ;;  %v429_v8 = vld [vmem:[%s352_s15 + $0x28] sm:$0xff]  ;;  %v420_v9 = vld [vmem:[#allocation8] sm:$0xff]  ;;  %v430_v10 = vld [vmem:[%s352_s15 + $0x30] sm:$0xff]  ;;  %1242 = vset.pattern.permute.xlu0 %v1455_v59  ;;  %1243 = vset.pattern.permute.xlu1 %v1455_v59  ;;  %s395_s16 = scalar_lea.vmem [#allocation11], %s1051_s12  ;;  %s1074_s27 = sshll.u32 %s1527_s6, 5 }
  0x9e   : > { %1110 = vmatprep.subr.bf16.mxu0 %v1109_v4  ;;  %1103 = vmatprep.mubr.msk.f32.mxu0 %vm432_vm0, %v420_v9  ;;  %v431_v11 = vld [vmem:[%s352_s15 + $0x38] sm:$0xff]  ;;  %v531_v12 = vld [vmem:[#allocation9 + $0x8] sm:$0xff]  ;;  %v530_v14 = vld [vmem:[#allocation9] sm:$0xff]  ;;  %v1117_v15 = vpack.c.bf16 %v429_v8, %v428_v7  ;;  %s1831_s3 = scalar_lea.hbm %s1881_s7, %s1074_s27  ;;  %s895_s20 = sshll.u32 %s395_s16, 4  ;;  %s896_s20 = int_to_ptr.vmem [resolvable:$true] %s895_s20 }
  0x9f   : > { %1112 = vmatpush3.bf16.msra.mxu0 %v1109_v4  ;;  %v533_v13 = vld [vmem:[#allocation9 + $0x18] sm:$0xff]  ;;  %v532_v17 = vld [vmem:[#allocation9 + $0x10] sm:$0xff]  ;;  %v535_v18 = vld [vmem:[#allocation9 + $0x28] sm:$0xff]  ;;  %v1121_v27 = vpack.c.bf16 %v431_v11, %v430_v10  ;;  %s876_s23 = scalar_lea.sflag [#allocation5], %s1727_s11  ;;  %s1366_s0 = scalar_lea.vmem %s896_s20, 32 }
  0xa0   : > { %1114 = vmatprep.subr.bf16.mxu0 %v1113_v6  ;;  %v1125_v16 = vpack.c.bf16 %v533_v13, %v531_v12  ;;  %v537_v19 = vld [vmem:[#allocation9 + $0x38] sm:$0xff]  ;;  %v1127_v20 = vpack.c.bf16 %v532_v17, %v530_v14  ;;  %v534_v22 = vld [vmem:[#allocation9 + $0x20] sm:$0xff]  ;;  %v536_v23 = vld [vmem:[#allocation9 + $0x30] sm:$0xff]  ;;  %p1367_p1 = scmp.ne.s32.totalorder %s896_s20, %s1366_s0  ;;  %p1913_p13 = scmp.ne.s32.totalorder %s1901_s17, 0 }
  0xa1   : > { %v1129_v21 = vpack.c.bf16 %v537_v19, %v535_v18  ;;  %v539_v24 = vld [vmem:[#allocation9 + $0x48] sm:$0xff]  ;;  %v541_v25 = vld [vmem:[#allocation9 + $0x58] sm:$0xff]  ;;  %v1131_v26 = vpack.c.bf16 %v536_v23, %v534_v22  ;;  %v538_v29 = vld [vmem:[#allocation9 + $0x40] sm:$0xff]  ;;  %s1457_s18 = smov [#allocation11]  }
  0xa2   : > { %1126 = vmatprep.subr.bf16.mxu1 %v1125_v16  ;;  %v1133_v28 = vpack.c.bf16 %v541_v25, %v539_v24  ;;  %v540_v30 = vld [vmem:[#allocation9 + $0x50] sm:$0xff]  ;;  %v1752_v31 = vld [vmem:[%s1731_s4 + $0x8] sm:$0xff]  ;;  %v1755_v32 = vld [vmem:[%s1731_s4 + $0x18] sm:$0xff]  ;;  %p1368_p6 = pnand %p1367_p1, %p1913_p13  ;;  %s1370_s22 = sshll.u32 %s1457_s18, 4  ;;  %s1371_s22 = int_to_ptr.vmem [resolvable:$false] %s1370_s22 }
  0xa3   : > { %1116 = vmatpush3.bf16.msra.mxu0 %v1113_v6  ;;  %1128 = vmatpush1.bf16.msra.mxu1 %v1127_v20  ;;  %v543_v33 = vld [vmem:[#allocation9 + $0x68] sm:$0xff]  ;;  %v545_v34 = vld [vmem:[#allocation9 + $0x78] sm:$0xff]  ;;  %v1135_v35 = vpack.c.bf16 %v540_v30, %v538_v29  ;;  %v1141_v36 = vpack.c.bf16 %v1755_v32, %v1752_v31  ;;  %v1760_v37 = vld [vmem:[%s1731_s4] sm:$0xff]  ;;  %s1372_s19 = scalar_lea.vmem %s1371_s22, 64  ;;  %p1373_p4 = scmp.lt.s32.totalorder %s896_s20, %s1371_s22 }
  0xa4   : > { %1118 = vmatprep.subr.bf16.mxu0 %v1117_v15  ;;  %1130 = vmatprep.subr.bf16.mxu1 %v1129_v21  ;;  %v1763_v38 = vld [vmem:[%s1731_s4 + $0x10] sm:$0xff]  ;;  %v1137_v39 = vpack.c.bf16 %v545_v34, %v543_v33  ;;  %v542_v40 = vld [vmem:[#allocation9 + $0x60] sm:$0xff]  ;;  %v1766_v42 = vld [vmem:[%s1731_s4 + $0x28] sm:$0xff]  ;;  %p1369_p10 = pneg %p1368_p6  ;;  %p1374_p7 = scmp.lt.s32.totalorder %s1372_s19, %s1366_s0 }
  0xa5   : > { %v544_v41 = vld [vmem:[#allocation9 + $0x70] sm:$0xff]  ;;  %v1769_v43 = vld [vmem:[%s1731_s4 + $0x38] sm:$0xff]  ;;  %v421_v44 = vld [vmem:[#allocation8 + $0x8] sm:$0xff]  ;;  %v1143_v45 = vpack.c.bf16 %v1763_v38, %v1760_v37 }
  0xa6   : > { %v422_v46 = vld [vmem:[#allocation8 + $0x10] sm:$0xff]  ;;  %v1139_v47 = vpack.c.bf16 %v544_v41, %v542_v40  ;;  %v1145_v48 = vpack.c.bf16 %v1769_v43, %v1766_v42  ;;  %v1776_v49 = vld [vmem:[%s1731_s4 + $0x20] sm:$0xff]  ;;  %v423_v51 = vld [vmem:[#allocation8 + $0x18] sm:$0xff]  ;;  %p1375_p3 = por %p1374_p7, %p1373_p4 }
  0xa7   : > { %1120 = vmatpush3.bf16.msra.mxu0 %v1117_v15  ;;  %1132 = vmatpush1.bf16.msra.mxu1 %v1131_v26  ;;  %v1779_v50 = vld [vmem:[%s1731_s4 + $0x30] sm:$0xff]  ;;  %v416_v54 = vld [vmem:[%s1876_s2] sm:$0xff]  ;;  %v417_v55 = vld [vmem:[%s1876_s2 + $0x8] sm:$0xff] }
  0xa8   : > { %1122 = vmatprep.subr.bf16.mxu0 %v1121_v27  ;;  %1134 = vmatprep.subr.bf16.mxu1 %v1133_v28  ;;  %v1147_v52 = vpack.c.bf16 %v1779_v50, %v1776_v49  ;;  %v418_v56 = vld [vmem:[%s1876_s2 + $0x10] sm:$0xff]  ;;  %v757_v57 = vld [vmem:[%s1879_s5] sm:$0xff]  ;;  %v758_v61 = vld [vmem:[%s1879_s5 + $0x8] sm:$0xff]  ;;  %p1376_p5 = pnand %p1375_p3, %p1369_p10 }
  0xa9   : > { %v759_v58 = vld [vmem:[%s1879_s5 + $0x10] sm:$0xff]  ;;  %v807_v60 = vld [vmem:[#allocation2] sm:$0x1]  ;;  %763 = vperm.xlu0 %1242, %v757_v57   ;;  %v760_v62 = vld [vmem:[%s1879_s5 + $0x18] sm:$0xff] }
  0xaa   : > { %773 = vperm.xlu1 %1243, %v759_v58   ;;  %1161 = vpush %v807_v60  ;;  %v419_v3 = vld [vmem:[%s1876_s2 + $0x18] sm:$0xff] }
  0xab   : > { %1124 = vmatpush3.bf16.msra.mxu0 %v1121_v27  ;;  %1136 = vmatpush1.bf16.msra.mxu1 %v1135_v35 }
  0xac   : > { %1142 = vmatprep.subr.bf16.mxu0 %v1141_v36  ;;  %1138 = vmatprep.subr.bf16.mxu1 %v1137_v39 }
  0xad   : > { %768 = vperm.xlu0 %1242, %v758_v61  }
  0xae   : > { %1104 = vmatmul.mubr.msk.f32.vlgmr.msra.gmra.mrb[0].mxu0 %vm432_vm0, %v421_v44  ;;  %778 = vperm.xlu1 %1243, %v760_v62  }
  0xaf   : > { %1106 = vmatprep.mubr.msk.f32.mxu0 %vm432_vm0, %v422_v46  ;;  %1144 = vmatpush1.bf16.msra.mxu0 %v1143_v45 }
  0xb0   : > { %1140 = vmatpush1.bf16.msra.mxu1 %v1139_v47  ;;  %1146 = vmatprep.subr.bf16.mxu0 %v1145_v48 }
  0xb1   : > { %1149 = vmatprep.subr.bf16.mxu1 %v1141_v36 }
  0xb2   : > { %1107 = vmatmul.mubr.msk.f32.gmra.mrb[2].mxu0 %vm432_vm0, %v423_v51 }
  0xb3   : > { %1148 = vmatpush1.bf16.msra.mxu0 %v1147_v52  ;;  %724 = vmatprep.mubr.f32.mxu0 %v1454_v53 }
  0xb6   : > { %1062 = vmatmul.mubr.msk.f32.vlgmr.msra.gmra.mrb[4].mxu0 %vm647_vm1, %v416_v54 }
  0xb7   : > { %730 = vmatprep.mubr.f32.mxu0 %v1454_v53 }
  0xba   : > { %1063 = vmatmul.mubr.msk.f32.gmra.mrb[6].mxu0 %vm647_vm1, %v417_v55 }
  0xbb   : > { %736 = vmatprep.mubr.f32.mxu0 %v1454_v53 }
  0xbe   : > { %1064 = vmatmul.mubr.msk.f32.gmra.mrb[8].mxu0 %vm647_vm1, %v418_v56 }
  0xdb   : > { %s1162_s15 = spop %1161 }
 0x128   : > { %v764_v11 = vpop.permute.xlu0 %763 }
 0x129   : > { %v774_v34 = vpop.permute.xlu1 %773 }
 0x12c   : > { %v769_v21 = vpop.permute.xlu0 %768 }
 0x181   : > { %v1105_v63 = vpop.f32.mrb[0].mxu0 }
 0x182   : > { %v511_v0 = vpop.f32.mrb[1].mxu0 }
 0x183   : > { %1058 = vmatmul.mubr.msk.f32.vlgmr.msra.gmra.mrb[0].mxu1 %vm432_vm0, %v511_v0 }
 0x184   : > { %1151 = vmatpush1.bf16.msra.mxu1 %v1143_v45  ;;  %628 = vmatprep.mubr.f32.mxu1 %v1454_v53 }
 0x185   : > { %v1108_v1 = vpop.f32.mrb[2].mxu0  ;;  %1150 = vmatprep.subr.bf16.mxu1 %v1145_v48 }
 0x186   : > { %v521_v2 = vpop.f32.mrb[3].mxu0 }
 0x187   : > { %1059 = vmatmul.mubr.msk.f32.gmra.mrb[2].mxu1 %vm432_vm0, %v1105_v63 }
 0x188   : > { %634 = vmatprep.mubr.f32.mxu1 %v1454_v53  ;;  %1152 = vmatpush1.bf16.msra.mxu1 %v1147_v52  ;;  %v779_v52 = vpop.permute.xlu1 %778 }
 0x189   : > { %v726_v4 = vpop.f32.mrb[4].mxu0 }
 0x18a   : > { %v728_v5 = vpop.f32.mrb[5].mxu0 }
 0x18b   : > { %1060 = vmatmul.mubr.msk.f32.gmra.mrb[4].mxu1 %vm432_vm0, %v521_v2 }
 0x18c   : > { %640 = vmatprep.mubr.f32.mxu1 %v1454_v53 }
 0x18d   : > { %v732_v6 = vpop.f32.mrb[6].mxu0 }
 0x18e   : > { %v734_v7 = vpop.f32.mrb[7].mxu0 }
 0x18f   : > { %1061 = vmatmul.mubr.msk.f32.gmra.mrb[6].mxu1 %vm432_vm0, %v1108_v1 }
 0x190   : > { %742 = vmatprep.mubr.f32.mxu1 %v1454_v53 }
 0x191   : > { %v738_v8 = vpop.f32.mrb[8].mxu0 }
 0x192   : > { %v740_v9 = vpop.f32.mrb[9].mxu0 }
 0x197   : > { %1065 = vmatmul.mubr.msk.f32.vlgmr.msra.gmra.mrb[6].mxu1 %vm647_vm1, %v419_v3 }
 0x256   : > { %v624_v10 = vpop.f32.mrb[0].mxu1 }
 0x257   : > { %v727_v12 = vadd.f32 %v726_v4, %v624_v10  ;;  %v626_v13 = vpop.f32.mrb[1].mxu1  ;;  %v809_v4 = vstv %s1162_s15 }
 0x258   : > { %v729_v14 = vadd.f32 %v728_v5, %v626_v13 }
 0x259   : > { %v749_v16 = vmax.f32 %v727_v12, 0.0 }
 0x25a   : > { %v630_v15 = vpop.f32.mrb[2].mxu1  ;;  %v750_v19 = vmax.f32 %v729_v14, 0.0 }
 0x25b   : > { %v733_v17 = vadd.f32 %v732_v6, %v630_v15  ;;  %v632_v18 = vpop.f32.mrb[3].mxu1  ;;  %v781_v25 = vmul.f32 %v764_v11, %v749_v16 }
 0x25c   : > { %v735_v20 = vadd.f32 %v734_v7, %v632_v18  ;;  %v782_v29 = vmul.f32 %v764_v11, %v750_v19  ;;  %v1456_v19 = vmov 1966171168  }
 0x25d   : > { %v751_v22 = vmax.f32 %v733_v17, 0.0 }
 0x25e   : > { %v752_v23 = vmax.f32 %v735_v20, 0.0  ;;  %v636_v24 = vpop.f32.mrb[4].mxu1  ;;  %v831_v20 = vunpack.c.l.s4 %v1456_v19 }
 0x25f   : > { %v783_v26 = vmul.f32 %v769_v21, %v751_v22  ;;  %v739_v27 = vadd.f32 %v738_v8, %v636_v24  ;;  %v638_v28 = vpop.f32.mrb[5].mxu1 }
 0x260   : > { %v784_v30 = vmul.f32 %v769_v21, %v752_v23  ;;  %v741_v33 = vadd.f32 %v740_v9, %v638_v28  ;;  %v833_v21 = vlaneseq  ;;  %v832_v22 = vunpack.c.0.s8 %v831_v20 }
 0x261   : > { %v789_v35 = vadd.f32 %v783_v26, %v781_v25  ;;  %v753_v36 = vmax.f32 %v739_v27, 0.0 }
 0x262   : > { %v798_v39 = vadd.f32 %v784_v30, %v782_v29  ;;  %v754_v40 = vmax.f32 %v741_v33, 0.0  ;;  %v834_v23 = vshrl.u32 %v833_v21, 7  ;;  %vm847_vm2 = vcmp.lt.s32.totalorder %v833_v21, 256 }
 0x263   : > { %v785_v41 = vmul.f32 %v774_v34, %v753_v36 }
 0x264   : > { %v786_v44 = vmul.f32 %v774_v34, %v754_v40  ;;  %v835_v27 = vsub.s32 %v832_v22, %v834_v23 }
 0x265   : > { %v790_v45 = vadd.f32 %v789_v35, %v785_v41 }
 0x266   : > { %v799_v46 = vadd.f32 %v798_v39, %v786_v44 }
 0x26a   : > { %v744_v47 = vpop.f32.mrb[6].mxu1 }
 0x26b   : > { %v755_v48 = vmax.f32 %v744_v47, 0.0  ;;  %v746_v51 = vpop.f32.mrb[7].mxu1 }
 0x26c   : > { %v756_v53 = vmax.f32 %v746_v51, 0.0 }
 0x26d   : > { %v787_v54 = vmul.f32 %v779_v52, %v755_v48 }
 0x26e   : > { %v788_v55 = vmul.f32 %v779_v52, %v756_v53 }
 0x26f   : > { %v791_v56 = vadd.f32 %v790_v45, %v787_v54 }
 0x270   : > { %v800_v57 = vadd.f32 %v799_v46, %v788_v55 }
 0x271   : > { %v792_v58 = vrot.slane %v791_v56, 4 }
 0x272   : > { %v801_v59 = vrot.slane %v800_v57, 4 }
 0x273   : > { %v793_v60 = vadd.f32 %v792_v58, %v791_v56 }
 0x274   : > { %v802_v61 = vadd.f32 %v801_v59, %v800_v57 }
 0x275   : > { %v794_v62 = vrot.slane %v793_v60, 2 }
 0x276   : > { %v803_v63 = vrot.slane %v802_v61, 2 }
 0x277   : > { %v795_v0 = vadd.f32 %v794_v62, %v793_v60 }
 0x278   : > { %v804_v1 = vadd.f32 %v803_v63, %v802_v61 }
 0x279   : > { %v796_v2 = vrot.slane %v795_v0, 1 }
 0x27a   : > { %v805_v3 = vrot.slane %v804_v1, 1 }
 0x27b   : > { %v797_v5 = vadd.f32 %v796_v2, %v795_v0 }
 0x27c   : > { %v806_v6 = vadd.f32 %v805_v3, %v804_v1 }
 0x27d   : > { %v810_v7 = vadd.f32 %v809_v4, %v797_v5 }
 0x27e   : > { %v811_v8 = vadd.f32 %v809_v4, %v806_v6 }
 0x280   : > { %v812_v9 = vmax.f32 %v810_v7, %v811_v8 }
 0x282   : > { %813 = vmax.xlane.f32.xlu0 %v812_v9 }
 0x30f   : > { %v814_v10 = vpop.xlane.xlu0 %813 }
 0x310   : > { %v815_v11 = vsub.f32 %v810_v7, %v814_v10  ;;  %v816_v12 = vsub.f32 %v811_v8, %v814_v10 }
 0x312   : > { %v817_v13 = vmul.f32 1.442695, %v815_v11  ;;  %v819_v14 = vmul.f32 1.442695, %v816_v12 }
 0x314   : > { %1244 = vpow2.f32 %v817_v13 }
 0x315   : > { %1246 = vpow2.f32 %v819_v14 }
 0x31e   : > { %v1245_v15 = vpop.eup %1244 }
 0x31f   : > { %v1247_v16 = vpop.eup %1246 }
 0x320   : > { %v821_v17 = vadd.f32 %v1247_v16, %v1245_v15 }
 0x322   : > { %822 = vadd.xlane.f32.xlu1 %v821_v17 }
 0x3af   : > { %v823_v18 = vpop.xlane.xlu1 %822 }
 0x3b0   : > { %1248 = vrcp.f32 %v823_v18 }
 0x3ba   : > { %v1249_v24 = vpop.eup %1248 }
 0x3bb   : > { %v825_v25 = vmul.f32 %v1249_v24, %v1245_v15  ;;  %v826_v26 = vmul.f32 %v1249_v24, %v1247_v16 }
 0x3bd   : > { %v854_v28 = vmul.f32 %v825_v25, %v1776_v49  ;;  %v855_v29 = vmul.f32 %v826_v26, %v1766_v42  ;;  %v850_v30 = vmul.f32 %v825_v25, %v1760_v37  ;;  %v851_v33 = vmul.f32 %v826_v26, %v1752_v31 }
 0x3be   : > { %v852_v34 = vmul.f32 %v825_v25, %v1763_v38  ;;  %v853_v39 = vmul.f32 %v826_v26, %v1755_v32  ;;  %v829_v40 = vcombine.low %v825_v25, %v826_v26  ;;  %v856_v37 = vmul.f32 %v825_v25, %v1779_v50 }
 0x3bf   : > { %v864_v35 = vadd.f32 %v855_v29, %v854_v28  ;;  %v858_v36 = vadd.f32 %v851_v33, %v850_v30  ;;  %v857_v31 = vmul.f32 %v826_v26, %v1769_v43 }
 0x3c0   : > { %v836_v41 = vrot.slane %v829_v40, %v835_v27  ;;  %v861_v49 = vadd.f32 %v853_v39, %v852_v34 }
 0x3c1   : > { %865 = vadd.xlane.f32.xlu1 %v864_v35  ;;  %859 = vadd.xlane.f32.xlu0 %v858_v36  ;;  %v867_v38 = vadd.f32 %v857_v31, %v856_v37 }
 0x3c2   : > { %v843_v42 = vrot.slane %v836_v41, %v835_v27 }
 0x3c4   : > { %849 = vst.msk [vmem:[%s395_s16] sm:$0x3] %vm847_vm2, %v843_v42 }
 0x3c5   : > { %862 = vadd.xlane.f32.xlu0 %v861_v49 }
 0x3c9   : > { %868 = vadd.xlane.f32.xlu0 %v867_v38 }
 0x3ca   : > { %1379 = shalt.err (!%p1376_p5)
}
 0x3cb   : > { %s1380_s11 = scalar_lea.hbm %s1831_s3, 32  ;;  %s1384_s28 = scalar_lea.hbm %s1881_s7, 64 }
 0x3cc   : > { %p1381_p9 = scmp.ne.s32.totalorder %s1831_s3, %s1380_s11  ;;  %p1385_p11 = scmp.lt.u32.totalorder %s1831_s3, %s1881_s7 }
 0x3cd   : > { %p1386_p2 = scmp.lt.u32.totalorder %s1384_s28, %s1380_s11  ;;  %p1388_p1 = scmp.lt.u32.totalorder %s1380_s11, %s1831_s3 }
 0x3ce   : > { %p1382_p0 = pnand %p1381_p9, %p1913_p13 }
 0x3cf   : > { %p1387_p12 = por %p1386_p2, %p1385_p11 }
 0x3d0   : > { %p1383_p8 = pneg %p1382_p0 }
 0x3d1   : > { %p1389_p6 = por %p1388_p1, %p1387_p12 }
 0x3d3   : > { %p1390_p10 = pnand %p1389_p6, %p1383_p8 }
 0x3d5   : > { %1393 = shalt.err (!%p1390_p10)
}
 0x3d6   : > { %1175 = dma.vmem_to_hbm [thread:$0]  (%p1913_p13), %s896_s20, 32, %s1831_s3, %s876_s23   ;;  %vm870_vm3 = vcmask 7168  }
 0x3d7   : > { %p403_p4 = scmp.lt.s32.totalorder %s1527_s6, 1 }
 0x3d9   : > { %s1922_s6 = smov (!%p403_p4, %s1527_s6), 1 }
 0x3da   : > { %s1073_s12 = sshll.u32 %s1922_s6, 5 }
 0x3db   : > { %s407_s24 = scalar_lea.vmem %s1882_s8, %s1073_s12 }
 0x44e   : > { %v866_v32 = vpop.xlane.xlu1 %865  ;;  %v860_v43 = vpop.xlane.xlu0 %859 }
 0x44f   : > { %873 = vst.msk [vmem:[%s407_s24 + $0x10] sm:$0xff] %vm870_vm3, %v866_v32  ;;  %871 = vst.msk [vmem:[%s407_s24] sm:$0xff] %vm870_vm3, %v860_v43 }
 0x452   : > { %v863_v50 = vpop.xlane.xlu0 %862 }
 0x453   : > { %872 = vst.msk [vmem:[%s407_s24 + $0x8] sm:$0xff] %vm870_vm3, %v863_v50 }
 0x456   : > { %v869_v44 = vpop.xlane.xlu0 %868 }
 0x457   : > { %874 = vst.msk [vmem:[%s407_s24 + $0x18] sm:$0xff] %vm870_vm3, %v869_v44 }
 0x458 PF: > { %s910_s17 = sand.u32 1, %s1432_s29   ;;  %p1914_p13 = scmp.ne.s32.totalorder %s1894_s13, 0 }
 0x459   : > { %p1915_p7 = scmp.ge.s32.totalorder %s1444_s10, 2  ;;  %s911_s6 = scalar_lea.sflag [#allocation5], %s910_s17 }
 0x45b   : > { %p1192_p3 = pnand %p1915_p7, %p1914_p13 }
 0x45d   : > { %1427 = dma.done.wait (!%p1192_p3), %s911_s6, 32  }
 0x45e   : > { %1429 = vsyncadd (!%p1192_p3), %s911_s6, 4294967264  ;;  %s1916_s26 = sld [smem:[#allocation17_spill]]  ;;  %p28_p5 = scmp.ge.s32.totalorder %s1622_s21, 4  }
 0x45f   : > { %s1917_s29 = smov %s1436_s30  ;;  %s1918_s30 = smov %s1440_s9 }
 0x460   : > { %s1920_s10 = smov %s1622_s21  ;;  %30 = sbr.rel (!%p28_p5) target bundleno = 12 (0xc), region = 126 }
 0x464   : > { %s1919_s9 = smov %s1916_s26 }
 0x467   :  { %924 = vsyncpa [#allocation4], 1 }
 0x468   :  { %926 = vsyncpa [#allocation4 + $0x1], 1 }
 0x469   :  { %927 = vsyncpa [#allocation7], 1 }
 0x46a   :  { %929 = vsyncpa [#allocation7 + $0x1], 1 }
 0x46b   :  { %930 = vsyncpa [#allocation10], 1 }
 0x46c   :  { %931 = vsyncpa [#allocation5], 1 }
 0x46d   :  { %933 = vsyncpa [#allocation5 + $0x1], 1 }

</bundles_post_ra>
